<compile_context>
chip_gen: v7x
topology: tpu7x:2x2x1
jax: 0.10.0
libtpu: 0.0.40
codegen_flags: <defaults>
</compile_context>

<pallas_src>
import functools

import jax
import jax.numpy as jnp
from jax.experimental import pallas as pl
from jax.experimental.pallas import tpu as pltpu

_MIB = 1024 * 1024


# ----------------------------- hardware sizing ------------------------------

def _tpu_params():
    """Returns (vmem_capacity_bytes, tensorcores_per_device).

    v7x: 64 MiB VMEM per TensorCore, 2 TCs/chip; v5e/v6e: 128 MiB, 1 TC.
    Falls back to the v5e/v6e numbers if the query is unavailable.
    """
    vmem = 128 * _MIB
    try:
        vmem = int(pltpu.get_tpu_info().vmem_capacity_bytes)
    except Exception:
        pass
    num_cores = 2 if vmem <= 64 * _MIB else 1
    return vmem, num_cores


def _sublane(itemsize):
    # Sub-32-bit dtypes pack along sublanes: 8 rows for f32, 16 bf16, 32 int8.
    return max(8, 32 // max(int(itemsize), 1))


def _padded_block_bytes(rows, lanes, itemsize):
    """VMEM footprint of a (rows, lanes) tile after (sublane, 128) padding."""
    r = int(pl.cdiv(rows, _sublane(itemsize))) * _sublane(itemsize)
    l = int(pl.cdiv(lanes, 128)) * 128
    return r * l * int(itemsize)


def _pick_batch_tile(b, per_sample_bytes, num_cores, budget_bytes):
    bb = max(1, min(b, budget_bytes // max(per_sample_bytes, 1)))
    if num_cores > 1 and b >= num_cores:
        # Need >= num_cores batch blocks so the "parallel" batch axis can be
        # split across the TensorCores sharing HBM (v7x megacore).
        bb = max(1, min(bb, b // num_cores))
    return int(bb)


def _pick_hw_tile(hw, c, itemsize, budget_bytes):
    c_pad = int(pl.cdiv(c, _sublane(itemsize))) * _sublane(itemsize)
    max_lanes = budget_bytes // max(c_pad * int(itemsize), 1)
    hw_tile = (max_lanes // 128) * 128
    if hw_tile >= hw:
        return int(hw)                  # whole sample fits: no HW split needed
    return int(max(128, hw_tile))       # multiple of 128 -> valid block shape


def _vmem_limit(block_bytes, weight_bytes, vmem_cap):
    # 2x double-buffered input block + 2x output block + resident weights + slack.
    want = 4 * block_bytes + 2 * weight_bytes + 8 * _MIB
    return int(min(vmem_cap, max(32 * _MIB, want)))


# --------------------------------- kernels ----------------------------------

def _excite(pooled_f32, w1t, w2t):
    """sigmoid(relu(pooled @ W1.T) @ W2.T); MXU matmuls, f32 accumulation."""
    w_dtype = w1t.dtype
    h = jnp.dot(pooled_f32.astype(w_dtype), w1t,
                preferred_element_type=jnp.float32)
    h = jnp.maximum(h, 0.0)
    s = jnp.dot(h.astype(w_dtype), w2t, preferred_element_type=jnp.float32)
    return jax.nn.sigmoid(s)


def _se_fused_kernel(x_ref, w1t_ref, w2t_ref, o_ref):
    """x_ref: (bb, C, HW); w1t_ref: W1.T (C, C_red); w2t_ref: W2.T (C_red, C)."""
    x = x_ref[...]                                         # native dtype slab
    hw = x.shape[2]
    # Squeeze: f32-accumulated mean over the spatial (lane) axis -> (bb, C).
    pooled = jnp.sum(x, axis=2, dtype=jnp.float32) * jnp.float32(1.0 / hw)
    gate = _excite(pooled, w1t_ref[...], w2t_ref[...]).astype(x.dtype)
    # Scale: broadcast the gate over HW in x's native dtype.
    o_ref[...] = (x * gate[:, :, None]).astype(o_ref.dtype)


def _se_gate_kernel(x_ref, w1t_ref, w2t_ref, gate_ref, acc_ref, *,
                    hw_total, ragged):
    """HW-split pass 1: pooled f32 accumulator over HW tiles, gate on last step."""
    h_idx = pl.program_id(1)

    @pl.when(h_idx == 0)
    def _():
        acc_ref[...] = jnp.zeros_like(acc_ref)

    x = x_ref[...]                                         # (bb, C, HW_TILE)
    if ragged:
        # Mask the undefined padded tail of the last HW block before pooling.
        lane = jax.lax.broadcasted_iota(jnp.int32, x.shape, 2) + h_idx * x.shape[2]
        x = jnp.where(lane < hw_total, x, jnp.zeros_like(x))
    acc_ref[...] += jnp.sum(x, axis=2, dtype=jnp.float32)

    @pl.when(h_idx == pl.num_programs(1) - 1)
    def _():
        pooled = acc_ref[...] * jnp.float32(1.0 / hw_total)
        gate = _excite(pooled, w1t_ref[...], w2t_ref[...])
        gate_ref[...] = gate[:, :, None].astype(gate_ref.dtype)   # (bb, C, 1)


def _se_scale_kernel(x_ref, gate_ref, o_ref):
    """HW-split pass 2: elementwise scale by the per-sample gate."""
    x = x_ref[...]
    o_ref[...] = (x * gate_ref[...].astype(x.dtype)).astype(o_ref.dtype)


# --------------------------------- wrapper -----------------------------------

@functools.partial(jax.jit, static_argnames=("batch_tile", "hw_tile",
                                              "force_hw_split"))
def se_layer(x, w1, w2, *, batch_tile=None, hw_tile=None, force_hw_split=False):
    """SELayer forward.  x: (B, C, H, W) NCHW.  w1: (C//r, C).  w2: (C, C//r).

    batch_tile / hw_tile / force_hw_split are optional tuning / test overrides.
    """
    b, c, h, w = x.shape
    hw = h * w
    c_red = w1.shape[0]
    itemsize = jnp.dtype(x.dtype).itemsize

    vmem_bytes, num_cores = _tpu_params()
    vmem_cap = min(112 * _MIB, vmem_bytes - 16 * _MIB)     # 112 MiB v5e/v6e, 48 MiB v7x
    budget = 4 * _MIB if vmem_bytes <= 64 * _MIB else 8 * _MIB

    x2 = x.reshape(b, c, hw)          # free, contiguous view: zero wrapper copies
    w1t = w1.T                        # (C, C_red) -- tiny, stored dtype
    w2t = w2.T                        # (C_red, C)
    w_bytes = (w1.size * jnp.dtype(w1.dtype).itemsize
               + w2.size * jnp.dtype(w2.dtype).itemsize)

    per_sample_bytes = _padded_block_bytes(c, hw, itemsize)
    need_split = force_hw_split or (
        4 * per_sample_bytes + 2 * w_bytes + 8 * _MIB > vmem_cap)

    if not need_split:
        bb = batch_tile if batch_tile is not None else _pick_batch_tile(
            b, per_sample_bytes, num_cores, budget)
        bb = max(1, min(int(bb), b))
        block_bytes = bb * per_sample_bytes
        out = pl.pallas_call(
            _se_fused_kernel,
            out_shape=jax.ShapeDtypeStruct(x2.shape, x.dtype),
            grid=(pl.cdiv(b, bb),),
            in_specs=[
                pl.BlockSpec((bb, c, hw), lambda i: (i, 0, 0)),
                pl.BlockSpec((c, c_red), lambda i: (0, 0)),     # resident weights
                pl.BlockSpec((c_red, c), lambda i: (0, 0)),
            ],
            out_specs=pl.BlockSpec((bb, c, hw), lambda i: (i, 0, 0)),
            compiler_params=pltpu.CompilerParams(
                dimension_semantics=("parallel",),
                vmem_limit_bytes=_vmem_limit(block_bytes, w_bytes, vmem_cap)),
            cost_estimate=pl.CostEstimate(
                flops=int(3 * b * c * hw + 4 * b * c * c_red),
                transcendentals=int(b * c),
                bytes_accessed=int(2 * x2.size * itemsize + w_bytes)),
        )(x2, w1t, w2t)
        return out.reshape(b, c, h, w)

    # ----- HW-split path (large per-sample slabs, mainly v7x 64 MiB VMEM) -----
    ht = hw_tile if hw_tile is not None else _pick_hw_tile(hw, c, itemsize, budget)
    ht = min(int(ht), hw)
    tile_bytes = _padded_block_bytes(c, ht, itemsize)
    bb = batch_tile if batch_tile is not None else _pick_batch_tile(
        b, tile_bytes, num_cores, budget)
    bb = max(1, min(int(bb), b))
    block_bytes = bb * tile_bytes
    n_hw = pl.cdiv(hw, ht)
    ragged = (hw % ht) != 0
    vlim = _vmem_limit(block_bytes, w_bytes, vmem_cap)

    # Pass 1: pool + excite -> per-sample gate (B, C, 1) in f32.
    gate = pl.pallas_call(
        functools.partial(_se_gate_kernel, hw_total=hw, ragged=ragged),
        out_shape=jax.ShapeDtypeStruct((b, c, 1), jnp.float32),
        grid=(pl.cdiv(b, bb), n_hw),
        in_specs=[
            pl.BlockSpec((bb, c, ht), lambda i, j: (i, 0, j)),
            pl.BlockSpec((c, c_red), lambda i, j: (0, 0)),
            pl.BlockSpec((c_red, c), lambda i, j: (0, 0)),
        ],
        out_specs=pl.BlockSpec((bb, c, 1), lambda i, j: (i, 0, 0)),
        scratch_shapes=[pltpu.VMEM((bb, c), jnp.float32)],
        compiler_params=pltpu.CompilerParams(
            dimension_semantics=("parallel", "arbitrary"),
            vmem_limit_bytes=vlim),
        cost_estimate=pl.CostEstimate(
            flops=int(2 * b * c * hw + 4 * b * c * c_red),
            transcendentals=int(b * c),
            bytes_accessed=int(x2.size * itemsize + w_bytes + b * c * 4)),
    )(x2, w1t, w2t)

    # Pass 2: elementwise scale by the gate.
    out = pl.pallas_call(
        _se_scale_kernel,
        out_shape=jax.ShapeDtypeStruct(x2.shape, x.dtype),
        grid=(pl.cdiv(b, bb), n_hw),
        in_specs=[
            pl.BlockSpec((bb, c, ht), lambda i, j: (i, 0, j)),
            pl.BlockSpec((bb, c, 1), lambda i, j: (i, 0, 0)),
        ],
        out_specs=pl.BlockSpec((bb, c, ht), lambda i, j: (i, 0, j)),
        compiler_params=pltpu.CompilerParams(
            dimension_semantics=("parallel", "parallel"),
            vmem_limit_bytes=vlim),
        cost_estimate=pl.CostEstimate(
            flops=int(b * c * hw),
            transcendentals=0,
            bytes_accessed=int(2 * x2.size * itemsize + b * c * 4)),
    )(x2, gate)
    return out.reshape(b, c, h, w)


# -------------------------------- reference ----------------------------------

def se_layer_ref(x, w1, w2):
    """Pure-JAX reference matching the PyTorch SELayer forward."""
    y = jnp.mean(x.astype(jnp.float32), axis=(2, 3))                # (B, C)
    y = jnp.maximum(y @ w1.astype(jnp.float32).T, 0.0)              # (B, C//r)
    y = jax.nn.sigmoid(y @ w2.astype(jnp.float32).T)                # (B, C)
    return (x.astype(jnp.float32) * y[:, :, None, None]).astype(x.dtype)


if __name__ == "__main__":
    key = jax.random.PRNGKey(0)
    keys = jax.random.split(key, 4)

    def run_case(case_key, b, c, h, w, reduction, **kw):
        kx, k1, k2 = jax.random.split(case_key, 3)
        c_red = max(c // reduction, 1)
        x = jax.random.normal(kx, (b, c, h, w), dtype=jnp.float32)
        # PyTorch Linear stores (out_features, in_features).
        w1 = jax.random.normal(k1, (c_red, c), dtype=jnp.float32) * (1.0 / c) ** 0.5
        w2 = jax.random.normal(k2, (c, c_red), dtype=jnp.float32) * (1.0 / c_red) ** 0.5
        out = jax.block_until_ready(se_layer(x, w1, w2, **kw))
        ref = se_layer_ref(x, w1, w2)
        assert out.shape == x.shape
        assert jnp.allclose(out, ref, atol=1e-4, rtol=1e-4), (
            f"mismatch vs reference for shape {(b, c, h, w)} opts={kw}")

    # Fused path, HW multiple of 128 (lane-dense stores).
    run_case(keys[0], 2, 32, 16, 16, 16)
    # Fused path, HW = 49 (< 128) -- no wrapper transposes, masked stores.
    run_case(keys[1], 4, 128, 7, 7, 16)
    # Fused path with a ragged batch grid (B=3, batch_tile=2, grid=cdiv).
    run_case(keys[2], 3, 64, 8, 8, 8, batch_tile=2)
    # HW-split path (accumulator + scale kernels) with a ragged HW tail.
    run_case(keys[3], 2, 32, 16, 20, 8, force_hw_split=True, hw_tile=128)

    print("KERNEL_OK")
</pallas_src>

<mosaic_0001>
module attributes {stable_mosaic.version = 11 : i64} {
  func.func @_se_fused_kernel(%arg0: i32, %arg1: memref<2x32x256xf32, #tpu.memory_space<vmem>>, %arg2: memref<32x2xf32, #tpu.memory_space<vmem>>, %arg3: memref<2x32xf32, #tpu.memory_space<vmem>>, %arg4: memref<2x32x256xf32, #tpu.memory_space<vmem>>) attributes {dimension_semantics = [#tpu.dimension_semantics<parallel>], iteration_bounds = array<i64: 1>, scalar_prefetch = 0 : i64, scratch_operands = 0 : i64, tpu.core_type = #tpu.core_type<tc>, window_params = [{transform_indices = @transform_0, window_bounds = array<i64: 2, 32, 256>}, {pipeline_mode = #tpu.pipeline_mode<synchronous>, transform_indices = @transform_1, window_bounds = array<i64: 32, 2>}, {pipeline_mode = #tpu.pipeline_mode<synchronous>, transform_indices = @transform_2, window_bounds = array<i64: 2, 32>}, {transform_indices = @transform_3, window_bounds = array<i64: 2, 32, 256>}]} {
    %c0 = arith.constant 0 : index
    %c0_0 = arith.constant 0 : index
    %c0_1 = arith.constant 0 : index
    %0 = vector.load %arg1[%c0, %c0_0, %c0_1] : memref<2x32x256xf32, #tpu.memory_space<vmem>>, vector<2x32x256xf32>
    %cst = arith.constant dense<0.000000e+00> : vector<2x32xf32>
    %1 = vector.multi_reduction <add>, %0, %cst [2] : vector<2x32x256xf32> to vector<2x32xf32>
    %cst_2 = arith.constant 3.906250e-03 : f32
    %2 = vector.broadcast %cst_2 : f32 to vector<2x32xf32>
    %3 = arith.mulf %1, %2 : vector<2x32xf32>
    %c0_3 = arith.constant 0 : index
    %c0_4 = arith.constant 0 : index
    %4 = vector.load %arg2[%c0_3, %c0_4] : memref<32x2xf32, #tpu.memory_space<vmem>>, vector<32x2xf32>
    %c0_5 = arith.constant 0 : index
    %c0_6 = arith.constant 0 : index
    %5 = vector.load %arg3[%c0_5, %c0_6] : memref<2x32xf32, #tpu.memory_space<vmem>>, vector<2x32xf32>
    %cst_7 = arith.constant dense<0.000000e+00> : vector<2x2xf32>
    %6 = tpu.matmul %3, %4, %cst_7 {dimension_numbers = #tpu.dot_dimension_numbers<[1], [0], [0], [1], [0, 0, 1, 1], [], []>} : vector<2x32xf32>, vector<32x2xf32>, vector<2x2xf32> -> vector<2x2xf32>
    %cst_8 = arith.constant 0.000000e+00 : f32
    %7 = vector.broadcast %cst_8 : f32 to vector<2x2xf32>
    %8 = arith.maximumf %6, %7 : vector<2x2xf32>
    %cst_9 = arith.constant dense<0.000000e+00> : vector<2x32xf32>
    %9 = tpu.matmul %8, %5, %cst_9 {dimension_numbers = #tpu.dot_dimension_numbers<[1], [0], [0], [1], [0, 0, 1, 1], [], []>} : vector<2x2xf32>, vector<2x32xf32>, vector<2x32xf32> -> vector<2x32xf32>
    %10 = arith.negf %9 : vector<2x32xf32>
    %11 = math.exp %10 : vector<2x32xf32>
    %cst_10 = arith.constant 1.000000e+00 : f32
    %12 = vector.broadcast %cst_10 : f32 to vector<2x32xf32>
    %13 = arith.addf %12, %11 : vector<2x32xf32>
    %14 = arith.divf %12, %13 : vector<2x32xf32>
    %15 = vector.shape_cast %14 : vector<2x32xf32> to vector<2x32x1xf32>
    %16 = vector.broadcast %15 : vector<2x32x1xf32> to vector<2x32x256xf32>
    %17 = arith.mulf %0, %16 : vector<2x32x256xf32>
    %c0_11 = arith.constant 0 : index
    %c0_12 = arith.constant 0 : index
    %c0_13 = arith.constant 0 : index
    %18 = vector.load %arg4[%c0_11, %c0_12, %c0_13] : memref<2x32x256xf32, #tpu.memory_space<vmem>>, vector<2x32x256xf32>
    tpu.vector_store %arg4[%c0_11, %c0_12, %c0_13], %17 {strides = array<i32>} : memref<2x32x256xf32, #tpu.memory_space<vmem>>, vector<2x32x256xf32>,
    return
  }
  func.func @transform_0(%arg0: i32) -> (i32, i32, i32) {
    %c0_i32 = arith.constant 0 : i32
    %c0_i32_0 = arith.constant 0 : i32
    %c0_i32_1 = arith.constant 0 : i32
    return %arg0, %c0_i32, %c0_i32_0 : i32, i32, i32
  }
  func.func @transform_1(%arg0: i32) -> (i32, i32) {
    %c0_i32 = arith.constant 0 : i32
    %c0_i32_0 = arith.constant 0 : i32
    %c0_i32_1 = arith.constant 0 : i32
    return %c0_i32, %c0_i32_0 : i32, i32
  }
  func.func @transform_2(%arg0: i32) -> (i32, i32) {
    %c0_i32 = arith.constant 0 : i32
    %c0_i32_0 = arith.constant 0 : i32
    %c0_i32_1 = arith.constant 0 : i32
    return %c0_i32, %c0_i32_0 : i32, i32
  }
  func.func @transform_3(%arg0: i32) -> (i32, i32, i32) {
    %c0_i32 = arith.constant 0 : i32
    %c0_i32_0 = arith.constant 0 : i32
    %c0_i32_1 = arith.constant 0 : i32
    return %arg0, %c0_i32, %c0_i32_0 : i32, i32, i32
  }
}

</mosaic_0001>

<bundles_post_ra>
// kernel: se_layer.1
= control target key start
LH: loop header
LB: loop body
LE: loop exit
PB: predicated region body
PF: predicated region fallthrough
CT: control target
= control target key end

     0   :  { %v395_v27 = vmov 0.0|0.0   ;;  %vm396_vm0 = vmmov 0   ;;  %v397_v31 = vmov 0.0   ;;  %v75_v32 = vlaneseq  ;;  %s601_s0 = inlined_call_operand.vmem [shape: f32[2,32,256], index: 0, kind: input, shape index: {}]   ;;  %s602_s1 = inlined_call_operand.vmem [shape: f32[32,2], index: 1, kind: input, shape index: {}]   ;;  %s603_s2 = inlined_call_operand.vmem [shape: f32[2,32], index: 2, kind: input, shape index: {}]   ;;  %s604_s3 = inlined_call_operand.vmem [shape: f32[2,32,256], index: 3, kind: output, shape index: {}]  }
   0x1   :  { %v421_v0 = vld [vmem:[%s601_s0 + $0x40] sm:$0xff]  ;;  %v426_v1 = vld [vmem:[%s601_s0 + $0x48] sm:$0xff]  ;;  %v443_v5 = vld [vmem:[%s601_s0 + $0x50] sm:$0xff]  ;;  %382 = vmatprep.subr.bf16.mxu0 %v395_v27  ;;  %374 = vmatprep.mubr.msk.f32.mxu0 %vm396_vm0, %v397_v31  ;;  %vm86_vm1 = vcmask 130112   ;;  %vm93_vm2 = vcmask 195712   ;;  %vm100_vm3 = vcmask 261312  }
   0x2   :  { %v431_v2 = vld [vmem:[%s601_s0] sm:$0xff]  ;;  %v42_v3 = vadd.f32 %v426_v1, %v421_v0  ;;  %v438_v4 = vld [vmem:[%s601_s0 + $0x8] sm:$0xff]  ;;  %v448_v6 = vld [vmem:[%s601_s0 + $0x58] sm:$0xff]  ;;  %377 = vmatprep.subr.mxu1 %v397_v31  ;;  %379 = vmatprep.mubr.msk.f32.mxu1 %vm396_vm0, %v397_v31  ;;  %v76_v34 = vand.u32 127, %v75_v32  ;;  %v526_v39 = vshrl.u32 %v75_v32, 7  ;;  %vm121_vm4 = vcmask 1041409  }
   0x3   :  { %v30_v7 = vadd.f32 %v438_v4, %v431_v2  ;;  %v455_v8 = vld [vmem:[%s601_s0 + $0x10] sm:$0xff]  ;;  %v460_v9 = vld [vmem:[%s601_s0 + $0x18] sm:$0xff]  ;;  %v45_v10 = vadd.f32 %v448_v6, %v443_v5  ;;  %v469_v12 = vld [vmem:[%s601_s0 + $0x60] sm:$0xff]  ;;  %vm123_vm5 = vcmask 261120   ;;  %vm201_vm6 = vcmask 1041408  }
   0x4   :  { %43 = vadd.xlane.f32.xlu1 %v42_v3  ;;  %v33_v11 = vadd.f32 %v460_v9, %v455_v8  ;;  %v474_v13 = vld [vmem:[%s601_s0 + $0x68] sm:$0xff]  ;;  %v479_v14 = vld [vmem:[%s601_s0 + $0x20] sm:$0xff]  ;;  %v493_v18 = vld [vmem:[%s601_s0 + $0x70] sm:$0xff]  ;;  %v81_v36 = vadd.s32 4294967288, %v76_v34  ;;  %v88_v38 = vadd.s32 4294967280, %v76_v34  ;;  %v95_v43 = vadd.s32 4294967272, %v76_v34 }
   0x5   :  { %31 = vadd.xlane.f32.xlu0 %v30_v7  ;;  %v484_v15 = vld [vmem:[%s601_s0 + $0x28] sm:$0xff]  ;;  %v48_v16 = vadd.f32 %v474_v13, %v469_v12  ;;  %v498_v19 = vld [vmem:[%s601_s0 + $0x78] sm:$0xff]  ;;  %v503_v20 = vld [vmem:[%s601_s0 + $0x30] sm:$0xff]  ;;  %v79_v47 = vsub.s32 %v76_v34, %v526_v39  ;;  %vm197_vm7 = vcmask 15360   ;;  %v283_v34 = vsub.s32 0, %v526_v39 }
   0x6   :  { %v36_v17 = vadd.f32 %v484_v15, %v479_v14  ;;  %v508_v21 = vld [vmem:[%s601_s0 + $0x38] sm:$0xff]  ;;  %v51_v22 = vadd.f32 %v498_v19, %v493_v18  ;;  %v62_v24 = vld [vmem:[%s602_s1] sm:$0xff]  ;;  %v63_v25 = vld [vmem:[%s602_s1 + $0x8] sm:$0xff]  ;;  %v84_v41 = vsub.s32 %v81_v36, %v526_v39  ;;  %v91_v45 = vsub.s32 %v88_v38, %v526_v39 }
   0x7   :  { %v39_v23 = vadd.f32 %v508_v21, %v503_v20  ;;  %v383_v26 = vpack.c.bf16 %v63_v25, %v62_v24  ;;  %v64_v28 = vld [vmem:[%s602_s1 + $0x10] sm:$0xff]  ;;  %v65_v29 = vld [vmem:[%s602_s1 + $0x18] sm:$0xff]  ;;  %v98_v54 = vsub.s32 %v95_v43, %v526_v39  ;;  %v66_v25 = vld [vmem:[%s603_s2] sm:$0x3] }
   0x8   :  { %46 = vadd.xlane.f32.xlu1 %v45_v10  ;;  %v386_v30 = vpack.c.bf16 %v65_v29, %v64_v28  ;;  %378 = vmatpush3.msk.msra.mxu1 %vm201_vm6, %v66_v25 }
   0x9   :  { %34 = vadd.xlane.f32.xlu0 %v33_v11  ;;  %384 = vmatpush3.bf16.msra.mxu0 %v383_v26 }
   0xa   :  { %385 = vmatprep.subr.bf16.mxu0 %v395_v27 }
   0xc   :  { %49 = vadd.xlane.f32.xlu1 %v48_v16 }
   0xd   :  { %37 = vadd.xlane.f32.xlu0 %v36_v17  ;;  %387 = vmatpush3.bf16.msra.mxu0 %v386_v30 }
  0x10   :  { %52 = vadd.xlane.f32.xlu1 %v51_v22 }
  0x11   :  { %40 = vadd.xlane.f32.xlu0 %v39_v23 }
  0x91   :  { %v44_v33 = vpop.xlane.xlu1 %43 }
  0x92   :  { %v32_v35 = vpop.xlane.xlu0 %31  ;;  %v58_v48 = vmul.f32 0.00390625, %v44_v33 }
  0x93   :  { %v54_v51 = vmul.f32 0.00390625, %v32_v35 }
  0x94   :  { %v105_v58 = vrot.slane %v58_v48, %v79_v47 }
  0x95   :  { %v47_v37 = vpop.xlane.xlu1 %46  ;;  %v80_v62 = vrot.slane %v54_v51, %v79_v47 }
  0x96   :  { %v35_v40 = vpop.xlane.xlu0 %34  ;;  %v59_v42 = vmul.f32 0.00390625, %v47_v37  ;;  %v302_v37 = vsub.s32 1, %v526_v39 }
  0x97   :  { %v55_v44 = vmul.f32 0.00390625, %v35_v40 }
  0x98   :  { %v109_v53 = vrot.slane %v59_v42, %v84_v41 }
  0x99   :  { %v50_v46 = vpop.xlane.xlu1 %49  ;;  %v85_v55 = vrot.slane %v55_v44, %v84_v41 }
  0x9a   :  { %v60_v49 = vmul.f32 0.00390625, %v50_v46  ;;  %v38_v50 = vpop.xlane.xlu0 %37  ;;  %v110_v3 = vsel %vm86_vm1, %v109_v53, %v105_v58 }
  0x9b   :  { %v56_v52 = vmul.f32 0.00390625, %v38_v50  ;;  %v87_v10 = vsel %vm86_vm1, %v85_v55, %v80_v62 }
  0x9c   :  { %v114_v56 = vrot.slane %v60_v49, %v91_v45 }
  0x9d   :  { %v53_v57 = vpop.xlane.xlu1 %52  ;;  %v92_v59 = vrot.slane %v56_v52, %v91_v45 }
  0x9e   :  { %v61_v60 = vmul.f32 0.00390625, %v53_v57  ;;  %v41_v61 = vpop.xlane.xlu0 %40  ;;  %v115_v11 = vsel %vm93_vm2, %v114_v56, %v110_v3 }
  0x9f   :  { %v57_v63 = vmul.f32 0.00390625, %v41_v61  ;;  %v94_v17 = vsel %vm93_vm2, %v92_v59, %v87_v10 }
  0xa0   :  { %v119_v7 = vrot.slane %v61_v60, %v98_v54 }
  0xa1   :  { %v99_v16 = vrot.slane %v57_v63, %v98_v54 }
  0xa2   :  { %v120_v22 = vsel %vm100_vm3, %v119_v7, %v115_v11 }
  0xa3   :  { %v101_v23 = vsel %vm100_vm3, %v99_v16, %v94_v17 }
  0xa4   :  { %v122_v24 = vsel %vm121_vm4, %v120_v22, %v101_v23 }
  0xa5   :  { %375 = vmatmul.mubr.msk.f32.vlgmr.msra.gmra.mrb[0].mxu0 %vm123_vm5, %v122_v24 }
 0x178   :  { %v192_v26 = vpop.f32.mrb[0].mxu0 }
 0x179   :  { %v196_v27 = vmax.f32 %v192_v26, 0.0  ;;  %v376_v28 = vpop.f32.mrb[1].mxu0 }
 0x17b   :  { %380 = vmatmul.mubr.msk.f32.vlgmr.msra.gmra.mrb[0].mxu1 %vm197_vm7, %v196_v27 }
 0x24e   :  { %v271_v29 = vpop.f32.mrb[0].mxu1 }
 0x24f   :  { %v358_v30 = vmul.f32 -1.442695, %v271_v29  ;;  %v381_v31 = vpop.f32.mrb[1].mxu1 }
 0x251   :  { %391 = vpow2.f32 %v358_v30 }
 0x25b   :  { %v392_v32 = vpop.eup %391 }
 0x25c   :  { %v278_v33 = vadd.f32 1.0, %v392_v32 }
 0x25e   :  { %393 = vrcp.f32 %v278_v33 }
 0x268   :  { %v394_v35 = vpop.eup %393 }
 0x269   :  { %v284_v36 = vrot.slane %v394_v35, %v283_v34  ;;  %v303_v38 = vrot.slane %v394_v35, %v302_v37 }
 0x26b   :  { %290 = vbcast.lane.b32.xlu1 %v284_v36, 264  ;;  %286 = vbcast.lane.b32.xlu0 %v284_v36, 256 }
 0x26f   :  { %294 = vbcast.lane.b32.xlu1 %v284_v36, 272  ;;  %305 = vbcast.lane.b32.xlu0 %v303_v38, 256 }
 0x273   :  { %298 = vbcast.lane.b32.xlu1 %v284_v36, 280  ;;  %313 = vbcast.lane.b32.xlu0 %v303_v38, 272 }
 0x277   :  { %309 = vbcast.lane.b32.xlu1 %v303_v38, 264 }
 0x27b   :  { %317 = vbcast.lane.b32.xlu1 %v303_v38, 280 }
 0x2dd   :  { %v291_v40 = vpop.permute.xlu1 %290  ;;  %v287_v41 = vpop.permute.xlu0 %286 }
 0x2de   :  { %v321_v42 = vmul.f32 %v291_v40, %v455_v8  ;;  %v322_v43 = vmul.f32 %v291_v40, %v460_v9  ;;  %v319_v44 = vmul.f32 %v287_v41, %v431_v2  ;;  %v320_v45 = vmul.f32 %v287_v41, %v438_v4 }
 0x2e0   :  { %337 = vst [vmem:[%s604_s3 + $0x10] sm:$0xff] %v321_v42  ;;  %338 = vst [vmem:[%s604_s3 + $0x18] sm:$0xff] %v322_v43 }
 0x2e1   :  { %335 = vst [vmem:[%s604_s3] sm:$0xff] %v319_v44  ;;  %336 = vst [vmem:[%s604_s3 + $0x8] sm:$0xff] %v320_v45  ;;  %v295_v8 = vpop.permute.xlu1 %294  ;;  %v306_v2 = vpop.permute.xlu0 %305 }
 0x2e2   :  { %v323_v4 = vmul.f32 %v295_v8, %v479_v14  ;;  %v324_v9 = vmul.f32 %v295_v8, %v484_v15  ;;  %v327_v39 = vmul.f32 %v306_v2, %v421_v0  ;;  %v328_v46 = vmul.f32 %v306_v2, %v426_v1 }
 0x2e4   :  { %339 = vst [vmem:[%s604_s3 + $0x20] sm:$0xff] %v323_v4  ;;  %340 = vst [vmem:[%s604_s3 + $0x28] sm:$0xff] %v324_v9 }
 0x2e5   :  { %343 = vst [vmem:[%s604_s3 + $0x40] sm:$0xff] %v327_v39  ;;  %344 = vst [vmem:[%s604_s3 + $0x48] sm:$0xff] %v328_v46  ;;  %v299_v14 = vpop.permute.xlu1 %298  ;;  %v314_v0 = vpop.permute.xlu0 %313 }
 0x2e6   :  { %v325_v1 = vmul.f32 %v299_v14, %v503_v20  ;;  %v326_v15 = vmul.f32 %v299_v14, %v508_v21  ;;  %v331_v47 = vmul.f32 %v314_v0, %v469_v12  ;;  %v332_v48 = vmul.f32 %v314_v0, %v474_v13 }
 0x2e8   :  { %341 = vst [vmem:[%s604_s3 + $0x30] sm:$0xff] %v325_v1  ;;  %342 = vst [vmem:[%s604_s3 + $0x38] sm:$0xff] %v326_v15 }
 0x2e9   :  { %347 = vst [vmem:[%s604_s3 + $0x60] sm:$0xff] %v331_v47  ;;  %348 = vst [vmem:[%s604_s3 + $0x68] sm:$0xff] %v332_v48  ;;  %v310_v20 = vpop.permute.xlu1 %309 }
 0x2ea   :  { %v329_v12 = vmul.f32 %v310_v20, %v443_v5  ;;  %v330_v13 = vmul.f32 %v310_v20, %v448_v6 }
 0x2ec   :  { %345 = vst [vmem:[%s604_s3 + $0x50] sm:$0xff] %v329_v12  ;;  %346 = vst [vmem:[%s604_s3 + $0x58] sm:$0xff] %v330_v13 }
 0x2ed   :  { %v318_v21 = vpop.permute.xlu1 %317 }
 0x2ee   :  { %v333_v49 = vmul.f32 %v318_v21, %v493_v18  ;;  %v334_v50 = vmul.f32 %v318_v21, %v498_v19 }
 0x2f0   :  { %349 = vst [vmem:[%s604_s3 + $0x70] sm:$0xff] %v333_v49  ;;  %350 = vst [vmem:[%s604_s3 + $0x78] sm:$0xff] %v334_v50 }

</bundles_post_ra>
